<compile_context>
chip_gen: v5e
topology: v5e:2x2
jax: 0.10.0
libtpu: 0.0.40
codegen_flags: <defaults>
</compile_context>

<pallas_src>
import numpy as np
import jax
import jax.numpy as jnp
from jax.experimental import pallas as pl
from jax.experimental.pallas import tpu as pltpu


def _make_adaptive_avg_kernel(weights):
    """weights: tuple of Python floats baked in as constants."""
    n = len(weights)

    def kernel(*refs):
        x_refs = refs[:n]        # N VMEM tiles, each (row_tile, lane)
        o_ref = refs[n]          # VMEM (row_tile, lane)
        acc = x_refs[0][...].astype(jnp.float32) * weights[0]
        for i in range(1, n):    # N is small & static -> unrolled VPU FMAs
            acc = acc + x_refs[i][...].astype(jnp.float32) * weights[i]
        o_ref[...] = acc.astype(o_ref.dtype)

    return kernel


def _choose_layout(total, last_dim, itemsize, n_inputs):
    """Pick a lane-dense (rows, lane) flattening and a dtype-aware row tile."""
    sub_min = max(8, 32 // itemsize)          # 8 f32, 16 bf16, 32 int8/fp8
    max_lane = min(total, 8192)

    lane = None
    # Prefer a lane width (multiple of 128) whose row count is a multiple of
    # the sublane minimum -> dense vregs, unmasked vst stores.
    for k in range(max_lane // 128, 0, -1):
        cand = 128 * k
        if total % cand == 0 and (total // cand) % sub_min == 0:
            lane = cand
            break
    if lane is None:
        for k in range(max_lane // 128, 0, -1):
            cand = 128 * k
            if total % cand == 0:
                lane = cand
                break
    if lane is None:
        # No 128-multiple factorization: fall back to the native last dim
        # (block equals the full dim -> legal, stores may be masked).
        lane = last_dim
    rows = total // lane

    # Row tile: largest multiple of sub_min dividing rows, bounded so the
    # double-buffered working set 2*(N+1)*block stays comfortably in VMEM on
    # every generation (v7x has only 64 MiB physical; v5e scoped default 16 MiB).
    max_block_bytes = min(2 << 20, (28 << 20) // (2 * (n_inputs + 1)))
    target_rows = max(sub_min, max_block_bytes // (lane * itemsize))
    if rows % sub_min != 0:
        row_tile = rows                       # block == full dim -> legal
    else:
        row_tile = sub_min
        t = 2 * sub_min
        limit = min(rows, target_rows)
        while t <= limit:
            if rows % t == 0:
                row_tile = t
            t += sub_min
    return rows, lane, row_tile


def adaptive_avg(xs, weights=None):
    """Weighted sum of a list/tuple of same-shape tensors (NCHW or any shape)."""
    if not isinstance(xs, (list, tuple)):
        # Matches the original PyTorch module's error behavior/message.
        raise ValueError("the type of weights is error.")
    n = len(xs)
    if weights is None:
        weights = [1.0 / n for _ in range(n)]
    weights = tuple(float(w) for w in weights)

    shape = xs[0].shape
    dtype = xs[0].dtype
    itemsize = jnp.dtype(dtype).itemsize
    total = int(np.prod(shape))
    last_dim = int(shape[-1])

    rows, lane, row_tile = _choose_layout(total, last_dim, itemsize, n)
    grid = (rows // row_tile,)

    # Free reshape (row-major contiguous) -> lane-dense 2D slabs.
    x2d = [x.reshape(rows, lane) for x in xs]

    block_bytes = row_tile * lane * itemsize
    required_vmem = 2 * (n + 1) * block_bytes          # double-buffered in+out
    vmem_limit = int(min(48 << 20, max(16 << 20, 2 * required_vmem)))

    block_spec = pl.BlockSpec((row_tile, lane), lambda i: (i, 0))

    out2d = pl.pallas_call(
        _make_adaptive_avg_kernel(weights),
        out_shape=jax.ShapeDtypeStruct((rows, lane), dtype),
        grid=grid,
        in_specs=[pl.BlockSpec((row_tile, lane), lambda i: (i, 0))
                  for _ in range(n)],
        out_specs=block_spec,
        compiler_params=pltpu.CompilerParams(
            dimension_semantics=("parallel",),
            vmem_limit_bytes=vmem_limit,
        ),
        cost_estimate=pl.CostEstimate(
            flops=2 * n * total,
            transcendentals=0,
            bytes_accessed=(n + 1) * total * itemsize,
        ),
    )(*x2d)

    return out2d.reshape(shape)


if __name__ == "__main__":
    key = jax.random.PRNGKey(0)
    k1, k2, k3 = jax.random.split(key, 3)
    shape = (2, 4, 16, 16)  # NCHW
    xs = [
        jax.random.normal(k1, shape, dtype=jnp.float32),
        jax.random.normal(k2, shape, dtype=jnp.float32),
        jax.random.normal(k3, shape, dtype=jnp.float32),
    ]

    # default weights (None) -> uniform 1/len(xs), matching the PyTorch module
    out = jax.block_until_ready(adaptive_avg(xs))
    ref = sum(x * (1.0 / len(xs)) for x in xs)
    np.testing.assert_allclose(np.asarray(out), np.asarray(ref), rtol=1e-6, atol=1e-6)

    # explicit weights path
    ws = [0.5, 0.3, 0.2]
    out_w = jax.block_until_ready(adaptive_avg(xs, weights=ws))
    ref_w = xs[0] * ws[0] + xs[1] * ws[1] + xs[2] * ws[2]
    np.testing.assert_allclose(np.asarray(out_w), np.asarray(ref_w), rtol=1e-6, atol=1e-6)

    # bf16 path (dtype-aware sublane tile = 16, native-dtype HBM traffic,
    # f32 accumulation inside the kernel)
    xs_bf = [x.astype(jnp.bfloat16) for x in xs]
    out_bf = jax.block_until_ready(adaptive_avg(xs_bf))
    ref_bf = sum(x.astype(jnp.float32) * (1.0 / len(xs_bf)) for x in xs_bf).astype(jnp.bfloat16)
    np.testing.assert_allclose(np.asarray(out_bf, dtype=np.float32),
                               np.asarray(ref_bf, dtype=np.float32), rtol=1e-2, atol=1e-2)

    print("KERNEL_OK")
</pallas_src>

<mosaic_0001>
module attributes {stable_mosaic.version = 11 : i64} {
  func.func @kernel(%arg0: i32, %arg1: memref<8x256xf32, #tpu.memory_space<vmem>>, %arg2: memref<8x256xf32, #tpu.memory_space<vmem>>, %arg3: memref<8x256xf32, #tpu.memory_space<vmem>>, %arg4: memref<8x256xf32, #tpu.memory_space<vmem>>) attributes {dimension_semantics = [#tpu.dimension_semantics<parallel>], iteration_bounds = array<i64: 1>, scalar_prefetch = 0 : i64, scratch_operands = 0 : i64, tpu.core_type = #tpu.core_type<tc>, window_params = [{transform_indices = @transform_0, window_bounds = array<i64: 8, 256>}, {transform_indices = @transform_1, window_bounds = array<i64: 8, 256>}, {transform_indices = @transform_2, window_bounds = array<i64: 8, 256>}, {transform_indices = @transform_3, window_bounds = array<i64: 8, 256>}]} {
    %c0 = arith.constant 0 : index
    %c0_0 = arith.constant 0 : index
    %0 = vector.load %arg1[%c0, %c0_0] : memref<8x256xf32, #tpu.memory_space<vmem>>, vector<8x256xf32>
    %cst = arith.constant 0.333333343 : f32
    %1 = vector.broadcast %cst : f32 to vector<8x256xf32>
    %2 = arith.mulf %0, %1 : vector<8x256xf32>
    %c0_1 = arith.constant 0 : index
    %c0_2 = arith.constant 0 : index
    %3 = vector.load %arg2[%c0_1, %c0_2] : memref<8x256xf32, #tpu.memory_space<vmem>>, vector<8x256xf32>
    %cst_3 = arith.constant 0.333333343 : f32
    %4 = vector.broadcast %cst_3 : f32 to vector<8x256xf32>
    %5 = arith.mulf %3, %4 : vector<8x256xf32>
    %6 = arith.addf %2, %5 : vector<8x256xf32>
    %c0_4 = arith.constant 0 : index
    %c0_5 = arith.constant 0 : index
    %7 = vector.load %arg3[%c0_4, %c0_5] : memref<8x256xf32, #tpu.memory_space<vmem>>, vector<8x256xf32>
    %cst_6 = arith.constant 0.333333343 : f32
    %8 = vector.broadcast %cst_6 : f32 to vector<8x256xf32>
    %9 = arith.mulf %7, %8 : vector<8x256xf32>
    %10 = arith.addf %6, %9 : vector<8x256xf32>
    %c0_7 = arith.constant 0 : index
    %c0_8 = arith.constant 0 : index
    %11 = vector.load %arg4[%c0_7, %c0_8] : memref<8x256xf32, #tpu.memory_space<vmem>>, vector<8x256xf32>
    tpu.vector_store %arg4[%c0_7, %c0_8], %10 {strides = array<i32>} : memref<8x256xf32, #tpu.memory_space<vmem>>, vector<8x256xf32>,
    return
  }
  func.func @transform_0(%arg0: i32) -> (i32, i32) {
    %c0_i32 = arith.constant 0 : i32
    %c0_i32_0 = arith.constant 0 : i32
    return %arg0, %c0_i32 : i32, i32
  }
  func.func @transform_1(%arg0: i32) -> (i32, i32) {
    %c0_i32 = arith.constant 0 : i32
    %c0_i32_0 = arith.constant 0 : i32
    return %arg0, %c0_i32 : i32, i32
  }
  func.func @transform_2(%arg0: i32) -> (i32, i32) {
    %c0_i32 = arith.constant 0 : i32
    %c0_i32_0 = arith.constant 0 : i32
    return %arg0, %c0_i32 : i32, i32
  }
  func.func @transform_3(%arg0: i32) -> (i32, i32) {
    %c0_i32 = arith.constant 0 : i32
    %c0_i32_0 = arith.constant 0 : i32
    return %arg0, %c0_i32 : i32, i32
  }
}

</mosaic_0001>

<bundles_post_ra>
// kernel: tpu_custom_call.1
= control target key start
LH: loop header
LB: loop body
LE: loop exit
PB: predicated region body
PF: predicated region fallthrough
CT: control target
= control target key end

     0   :  { %8 = vsyncpa [#allocation3], 0  ;;  %s234_s0 = inlined_call_operand.hbm [shape: f32[8,256], index: 0, kind: input, shape index: {}]   ;;  %s235_s1 = inlined_call_operand.hbm [shape: f32[8,256], index: 1, kind: input, shape index: {}]   ;;  %s236_s2 = inlined_call_operand.hbm [shape: f32[8,256], index: 2, kind: input, shape index: {}]   ;;  %s237_s3 = inlined_call_operand.hbm [shape: f32[8,256], index: 3, kind: output, shape index: {}]  }
   0x1   :  { %9 = vsyncpa [#allocation6], 0  ;;  %s27_s14 = sshll.u32 %s235_s1, 4  ;;  %s28_s14 = int_to_ptr.hbm [resolvable:$true] %s27_s14 }
   0x2   :  { %10 = vsyncpa [#allocation4], 0  ;;  %s198_s15 = smov [#allocation5]   ;;  %s16_s19 = sshll.u32 %s234_s0, 4  ;;  %s17_s19 = int_to_ptr.hbm [resolvable:$true] %s16_s19 }
   0x3   :  { %s29_s16 = sshll.u32 %s198_s15, 4  ;;  %s199_s20 = smov [#allocation2]   ;;  %s30_s16 = int_to_ptr.vmem [resolvable:$true] %s29_s16 }
   0x4   :  { %32 = dma.hbm_to_vmem [thread:$0]  %s28_s14, 256, %s30_s16, [#allocation6]  }
   0x5   :  { %s18_s21 = sshll.u32 %s199_s20, 4  ;;  %s38_s24 = sshll.u32 %s236_s2, 4  ;;  %s19_s21 = int_to_ptr.vmem [resolvable:$true] %s18_s21  ;;  %s39_s24 = int_to_ptr.hbm [resolvable:$true] %s38_s24 }
   0x6   :  { %21 = dma.hbm_to_vmem [thread:$0]  %s17_s19, 256, %s19_s21, [#allocation3]  }
   0x7   :  { %s200_s1 = smov [#allocation7]  }
   0x8   :  { %s40_s25 = sshll.u32 %s200_s1, 4  ;;  %s41_s25 = int_to_ptr.vmem [resolvable:$true] %s40_s25 }
   0x9   :  { %43 = dma.hbm_to_vmem [thread:$0]  %s39_s24, 256, %s41_s25, [#allocation6]  }
   0xa   :  { %192 = dma.done.wait [#allocation3], 256  }
   0xb   :  { %193 = vsyncadd [#allocation3], 4294967040 }
   0xc   :  { %194 = dma.done.wait [#allocation6], 512  }
   0xd   :  { %195 = vsyncadd [#allocation6], 4294966784  ;;  %v56_v0 = vld [vmem:[#allocation2] sm:$0xff]  ;;  %v60_v1 = vld [vmem:[#allocation5] sm:$0xff]  ;;  %s201_s0 = smov [#allocation8]   ;;  %s81_s28 = sshll.u32 %s237_s3, 4  ;;  %s82_s28 = int_to_ptr.hbm [resolvable:$true] %s81_s28 }
   0xe   :  { %v66_v2 = vld [vmem:[#allocation7] sm:$0xff]  ;;  %v58_v3 = vmul.f32 0.33333334, %v56_v0  ;;  %v62_v4 = vmul.f32 0.33333334, %v60_v1  ;;  %v57_v6 = vld [vmem:[#allocation2 + $0x8] sm:$0xff] }
   0xf   :  { %v68_v5 = vmul.f32 0.33333334, %v66_v2  ;;  %v61_v7 = vld [vmem:[#allocation5 + $0x8] sm:$0xff]  ;;  %v67_v8 = vld [vmem:[#allocation7 + $0x8] sm:$0xff]  ;;  %v59_v10 = vmul.f32 0.33333334, %v57_v6 }
  0x10   :  { %v64_v9 = vadd.f32 %v62_v4, %v58_v3  ;;  %v63_v11 = vmul.f32 0.33333334, %v61_v7  ;;  %v69_v12 = vmul.f32 0.33333334, %v67_v8  ;;  %s79_s2 = sshll.u32 %s201_s0, 4  ;;  %s80_s2 = int_to_ptr.vmem [resolvable:$true] %s79_s2 }
  0x12   :  { %v70_v13 = vadd.f32 %v68_v5, %v64_v9  ;;  %v65_v14 = vadd.f32 %v63_v11, %v59_v10 }
  0x14   :  { %72 = vst [vmem:[#allocation8] sm:$0xff] %v70_v13  ;;  %v71_v15 = vadd.f32 %v69_v12, %v65_v14 }
  0x16   :  { %73 = vst [vmem:[#allocation8 + $0x8] sm:$0xff] %v71_v15 }
  0x17   :  { %84 = dma.vmem_to_hbm [thread:$0]  %s80_s2, 256, %s82_s28, [#allocation4]  }
  0x18   :  { %196 = dma.done.wait [#allocation4], 256  }
  0x19   :  { %197 = vsyncadd [#allocation4], 4294967040 }
  0x1a   :  { %89 = vsyncpa [#allocation3], 1 }
  0x1b   :  { %90 = vsyncpa [#allocation6], 1 }
  0x1c   :  { %91 = vsyncpa [#allocation4], 1 }

</bundles_post_ra>
